<compile_context>
chip_gen: v5e
topology: v5e:2x2
jax: 0.10.0
libtpu: 0.0.40
codegen_flags: <defaults>
</compile_context>

<pallas_src>
import numpy as np
import jax
import jax.numpy as jnp
from jax.experimental import pallas as pl
from jax.experimental.pallas import tpu as pltpu


# ----------------------------------------------------------------------------
# Kernel 1: encoder + RRGM stand-in + pred einsum/softmax + DRPH pred channels
# (one grid step == one batch element; A and B fused on the lane axis)
# ----------------------------------------------------------------------------

def coarse_stage_kernel(x_ref, encw_ref, encb_ref, qebf_ref, qef32_ref,
                        wpa_ref, wpb_ref, drphb_ref, yc_ref):
    hw = x_ref.shape[2] // 2
    hidden = encw_ref.shape[0]

    # stride-4 encoder 1x1 conv over [A | B] lane-concatenated patches,
    # ONE bf16 matmul; bias as an in-kernel VPU broadcast add.
    f = jnp.dot(encw_ref[...], x_ref[0],
                preferred_element_type=jnp.float32) + encb_ref[...]   # (hidden, 2hw)

    fA = f[:, :hw]
    fB = f[:, hw:]
    diff_bf = (fA - fB).astype(jnp.bfloat16)

    # ---- RRGM stand-in: query cross-attention over the feature difference --
    # TODO(synk): real RRGM (nheads=8, dim_feedforward=2048, dec_layers=6) is
    # not defined in the provided source.
    scores = jnp.dot(qebf_ref[...], diff_bf,
                     preferred_element_type=jnp.float32)              # (Q, hw)
    scores = scores * float(1.0 / np.sqrt(hidden))
    m = jnp.max(scores, axis=-1, keepdims=True)
    e = jnp.exp(scores - m)
    attn = e * pl.reciprocal(jnp.sum(e, axis=-1, keepdims=True), approx=True)
    delta = jax.lax.dot_general(attn.astype(jnp.bfloat16), diff_bf,
                                (((1,), (1,)), ((), ())),
                                preferred_element_type=jnp.float32)   # (Q, hidden)
    token_bf = (qef32_ref[...] + delta).astype(jnp.bfloat16)

    # ---- einsum('bqc,bchw->bqhw') for A and B in ONE matmul + softmax(q) ----
    s = jnp.dot(token_bf, f.astype(jnp.bfloat16),
                preferred_element_type=jnp.float32)                   # (Q, 2hw)
    m2 = jnp.max(s, axis=0, keepdims=True)
    e2 = jnp.exp(s - m2)
    p_bf = (e2 * pl.reciprocal(jnp.sum(e2, axis=0, keepdims=True), approx=True)
            ).astype(jnp.bfloat16)

    # ---- DRPH prediction-channel 1x1 conv at COARSE resolution -------------
    # The shared DRPH bias is added here once; the bilinear upsample weights
    # sum to 1 so the constant is preserved -- it must NOT be added again in
    # the image branch (kernel 2).
    yc = (jnp.dot(wpa_ref[...], p_bf[:, :hw], preferred_element_type=jnp.float32)
          + jnp.dot(wpb_ref[...], p_bf[:, hw:], preferred_element_type=jnp.float32)
          + drphb_ref[...])                                           # (out_ch, hw)
    yc_ref[0] = yc.astype(yc_ref.dtype)


# ----------------------------------------------------------------------------
# Kernel 2: separable bf16 bilinear x4 upsample + DRPH image-channel mix
# ----------------------------------------------------------------------------

def upsample_head_kernel(yc_ref, img_ref, wct_ref, wr_ref, wimg_ref, o_ref):
    out_ch = o_ref.shape[1]
    h = wr_ref.shape[1]
    n_img = img_ref.shape[1]

    # column interpolation for both channels at once: (out_ch*h, w) @ (w, W)
    ycol = jnp.dot(yc_ref[0], wct_ref[...],
                   preferred_element_type=jnp.float32)                # (out_ch*h, W)

    wimg = wimg_ref[...]                                              # (out_ch, n_img) f32

    for c in range(out_ch):                  # static loop, out_ch == 2
        # row interpolation per channel: (H, h) @ (h, W)
        up_c = jnp.dot(wr_ref[...], ycol[c * h:(c + 1) * h, :].astype(jnp.bfloat16),
                       preferred_element_type=jnp.float32)            # (H, W)
        acc = up_c
        # DRPH image-channel 1x1 conv as a VPU weighted sum of (H, W) slabs
        # (runs in VALU slack; bias already applied at coarse res -- not here).
        for cc in range(n_img):              # static loop, 2*Cimg == 6
            acc = acc + img_ref[0, cc].astype(jnp.float32) * wimg[c:c + 1, cc:cc + 1]
        o_ref[0, c] = acc


# ----------------------------------------------------------------------------
# Wrapper
# ----------------------------------------------------------------------------

def strobustnet_forward(A, B, params, consts):
    Bn, Cimg, H, W = A.shape
    s = 4
    h, w = H // s, W // s
    hw = h * w
    Cin = Cimg * s * s

    hidden = consts["enc_w"].shape[0]
    Q = consts["qe_bf"].shape[0]
    out_ch = consts["w_predA"].shape[0]

    # patchify (space-to-depth) both images; A|B concatenated on the lane axis
    xA = space_to_depth(A, s).reshape(Bn, Cin, hw)
    xB = space_to_depth(B, s).reshape(Bn, Cin, hw)
    x_cat = jnp.concatenate([xA, xB], axis=2).astype(jnp.bfloat16)    # (Bn, Cin, 2hw)

    # full-res images channel-stacked for the DRPH image path (bf16 halves DMA)
    # TODO(synk): this is a second read of the same pixels in a different
    # layout; it could be removed by emitting the head output in patchified
    # layout at the cost of an in-kernel depth-to-space of the upsampled maps.
    img_cat = jnp.concatenate([A, B], axis=1).astype(jnp.bfloat16)    # (Bn, 2Cimg, H, W)

    cparams = pltpu.CompilerParams(
        dimension_semantics=("parallel",),
        vmem_limit_bytes=48 * 1024 * 1024)

    # ---- call 1: coarse prediction maps -------------------------------------
    yc = pl.pallas_call(
        coarse_stage_kernel,
        out_shape=jax.ShapeDtypeStruct((Bn, out_ch, hw), jnp.bfloat16),
        grid=(Bn,),
        in_specs=[
            pl.BlockSpec((1, Cin, 2 * hw), lambda i: (i, 0, 0)),      # x_cat
            pl.BlockSpec((hidden, Cin), lambda i: (0, 0)),            # enc_w (bf16)
            pl.BlockSpec((hidden, 1), lambda i: (0, 0)),              # enc_b
            pl.BlockSpec((Q, hidden), lambda i: (0, 0)),              # query_embed bf16
            pl.BlockSpec((Q, hidden), lambda i: (0, 0)),              # query_embed f32
            pl.BlockSpec((out_ch, Q), lambda i: (0, 0)),              # w_predA (bf16)
            pl.BlockSpec((out_ch, Q), lambda i: (0, 0)),              # w_predB (bf16)
            pl.BlockSpec((out_ch, 1), lambda i: (0, 0)),              # drph_b
        ],
        out_specs=pl.BlockSpec((1, out_ch, hw), lambda i: (i, 0, 0)),
        compiler_params=cparams,
    )(x_cat, consts["enc_w"], consts["enc_b"], consts["qe_bf"], consts["qe_f32"],
      consts["w_predA"], consts["w_predB"], consts["drph_b"])

    # free wrapper-side reshape: (Bn, out_ch, h*w) -> (Bn, out_ch*h, w)
    yc2d = yc.reshape(Bn, out_ch * h, w)

    # ---- call 2: separable bilinear x4 upsample + image-channel head --------
    out = pl.pallas_call(
        upsample_head_kernel,
        out_shape=jax.ShapeDtypeStruct((Bn, out_ch, H, W), jnp.float32),
        grid=(Bn,),
        in_specs=[
            pl.BlockSpec((1, out_ch * h, w), lambda i: (i, 0, 0)),        # coarse maps
            pl.BlockSpec((1, 2 * Cimg, H, W), lambda i: (i, 0, 0, 0)),    # images
            pl.BlockSpec((w, W), lambda i: (0, 0)),                       # Wc^T (bf16)
            pl.BlockSpec((H, h), lambda i: (0, 0)),                       # Wr   (bf16)
            pl.BlockSpec((out_ch, 2 * Cimg), lambda i: (0, 0)),           # image weights
        ],
        out_specs=pl.BlockSpec((1, out_ch, H, W), lambda i: (i, 0, 0, 0)),
        compiler_params=cparams,
    )(yc2d, img_cat, consts["wc_T"], consts["wr"], consts["w_img"])

    return [out]


# ----------------------------------------------------------------------------
# Parameter / constant setup (plain JAX / numpy, hoisted out of the forward)
# ----------------------------------------------------------------------------

def bilinear_matrix(n_in, scale):
    """nn.Upsample(mode='bilinear', align_corners=False) as a matrix (numpy)."""
    n_out = n_in * scale
    i = np.arange(n_out)
    src = np.clip((i + 0.5) / scale - 0.5, 0.0, n_in - 1)
    x0 = np.floor(src).astype(np.int64)
    x1 = np.minimum(x0 + 1, n_in - 1)
    frac = (src - x0).astype(np.float32)
    M = np.zeros((n_out, n_in), np.float32)
    M[i, x0] += (1.0 - frac)
    M[i, x1] += frac
    return M


def space_to_depth(x, s):
    Bn, C, H, W = x.shape
    x = x.reshape(Bn, C, H // s, s, W // s, s)
    x = jnp.transpose(x, (0, 1, 3, 5, 2, 4))
    return x.reshape(Bn, C * s * s, H // s, W // s)


def init_params(key, hidden=32, num_queries=8, in_ch=3, out_ch=2):
    k = jax.random.split(key, 5)
    s = 4
    cin = in_ch * s * s
    p = {}
    # TODO(synk): real multi_scale_encoder_decoder (encoder_dim=256) / RRGM /
    # DRPH are not provided in the source; synthetic stand-ins are used and
    # the dead stride-16/8 encoder branches (never consumed) were dropped.
    p["enc4_w"] = jax.random.normal(k[0], (hidden, cin), jnp.float32) / np.sqrt(cin)
    p["enc4_b"] = 0.1 * jax.random.normal(k[3], (hidden, 1), jnp.float32)
    p["query_embed"] = jax.random.normal(k[1], (num_queries, hidden), jnp.float32)
    cin_d = 2 * num_queries + 2 * in_ch
    p["drph_w"] = jax.random.normal(k[2], (out_ch, cin_d), jnp.float32) / np.sqrt(cin_d)
    p["drph_b"] = 0.1 * jax.random.normal(k[4], (out_ch, 1), jnp.float32)
    return p


def prepare_constants(params, H, W):
    """One-time prep: separable bilinear factors, bf16 weight copies, splits."""
    s = 4
    h, w = H // s, W // s
    Q = params["query_embed"].shape[0]

    dw = params["drph_w"]
    return {
        "enc_w": params["enc4_w"].astype(jnp.bfloat16),        # (hidden, Cin=48)
        "enc_b": params["enc4_b"],                             # (hidden, 1) f32
        "qe_bf": params["query_embed"].astype(jnp.bfloat16),
        "qe_f32": params["query_embed"],
        "w_predA": dw[:, :Q].astype(jnp.bfloat16),             # (out_ch, Q)
        "w_predB": dw[:, Q:2 * Q].astype(jnp.bfloat16),
        "drph_b": params["drph_b"],                            # (out_ch, 1) f32
        "w_img": dw[:, 2 * Q:],                                # (out_ch, 2*Cimg) f32
        # separable x4 bilinear factors; exact in bf16 (fractions are k/8)
        "wc_T": jnp.asarray(bilinear_matrix(w, s).T).astype(jnp.bfloat16),  # (w, W)
        "wr": jnp.asarray(bilinear_matrix(h, s)).astype(jnp.bfloat16),      # (H, h)
    }


# ----------------------------------------------------------------------------
if __name__ == "__main__":
    key = jax.random.PRNGKey(0)
    kA, kB, kP = jax.random.split(key, 3)

    Bn, Cimg, H, W = 2, 3, 16, 16
    hidden, num_queries = 32, 8

    A = jax.random.normal(kA, (Bn, Cimg, H, W), jnp.float32)
    Bimg = jax.random.normal(kB, (Bn, Cimg, H, W), jnp.float32)
    params = init_params(kP, hidden=hidden, num_queries=num_queries,
                         in_ch=Cimg, out_ch=2)
    consts = prepare_constants(params, H, W)

    fwd = jax.jit(strobustnet_forward)
    out = fwd(A, Bimg, params, consts)
    out = jax.block_until_ready(out[0])
    assert out.shape == (Bn, 2, H, W)
    print("KERNEL_OK")
</pallas_src>

<mosaic_0001>
module attributes {stable_mosaic.version = 11 : i64} {
  func.func @upsample_head_kernel(%arg0: i32, %arg1: memref<1x8x4xbf16, #tpu.memory_space<vmem>>, %arg2: memref<1x6x16x16xbf16, #tpu.memory_space<vmem>>, %arg3: memref<4x16xbf16, #tpu.memory_space<vmem>>, %arg4: memref<16x4xbf16, #tpu.memory_space<vmem>>, %arg5: memref<2x6xf32, #tpu.memory_space<vmem>>, %arg6: memref<1x2x16x16xf32, #tpu.memory_space<vmem>>) attributes {dimension_semantics = [#tpu.dimension_semantics<parallel>], iteration_bounds = array<i64: 2>, scalar_prefetch = 0 : i64, scratch_operands = 0 : i64, tpu.core_type = #tpu.core_type<tc>, window_params = [{transform_indices = @transform_0, window_bounds = array<i64: 1, 8, 4>}, {transform_indices = @transform_1, window_bounds = array<i64: 1, 6, 16, 16>}, {pipeline_mode = #tpu.pipeline_mode<synchronous>, transform_indices = @transform_2, window_bounds = array<i64: 4, 16>}, {pipeline_mode = #tpu.pipeline_mode<synchronous>, transform_indices = @transform_3, window_bounds = array<i64: 16, 4>}, {pipeline_mode = #tpu.pipeline_mode<synchronous>, transform_indices = @transform_4, window_bounds = array<i64: 2, 6>}, {transform_indices = @transform_5, window_bounds = array<i64: 1, 2, 16, 16>}]} {
    %c0 = arith.constant 0 : index
    %c0_0 = arith.constant 0 : index
    %c0_1 = arith.constant 0 : index
    %0 = vector.load %arg1[%c0, %c0_0, %c0_1] : memref<1x8x4xbf16, #tpu.memory_space<vmem>>, vector<1x8x4xbf16>
    %1 = vector.shape_cast %0 : vector<1x8x4xbf16> to vector<8x4xbf16>
    %c0_2 = arith.constant 0 : index
    %c0_3 = arith.constant 0 : index
    %2 = vector.load %arg3[%c0_2, %c0_3] : memref<4x16xbf16, #tpu.memory_space<vmem>>, vector<4x16xbf16>
    %cst = arith.constant dense<0.000000e+00> : vector<8x16xf32>
    %3 = tpu.matmul %1, %2, %cst {dimension_numbers = #tpu.dot_dimension_numbers<[1], [0], [0], [1], [0, 0, 1, 1], [], []>} : vector<8x4xbf16>, vector<4x16xbf16>, vector<8x16xf32> -> vector<8x16xf32>
    %c0_4 = arith.constant 0 : index
    %c0_5 = arith.constant 0 : index
    %4 = vector.load %arg5[%c0_4, %c0_5] : memref<2x6xf32, #tpu.memory_space<vmem>>, vector<2x6xf32>
    %c0_6 = arith.constant 0 : index
    %c0_7 = arith.constant 0 : index
    %5 = vector.load %arg4[%c0_6, %c0_7] : memref<16x4xbf16, #tpu.memory_space<vmem>>, vector<16x4xbf16>
    %6 = vector.extract_strided_slice %3 {offsets = [0, 0], sizes = [4, 16], strides = [1, 1]} : vector<8x16xf32> to vector<4x16xf32>
    %7 = arith.truncf %6 : vector<4x16xf32> to vector<4x16xbf16>
    %cst_8 = arith.constant dense<0.000000e+00> : vector<16x16xf32>
    %8 = tpu.matmul %5, %7, %cst_8 {dimension_numbers = #tpu.dot_dimension_numbers<[1], [0], [0], [1], [0, 0, 1, 1], [], []>} : vector<16x4xbf16>, vector<4x16xbf16>, vector<16x16xf32> -> vector<16x16xf32>
    %c0_9 = arith.constant 0 : index
    %c0_10 = arith.constant 0 : index
    %c0_11 = arith.constant 0 : index
    %c0_12 = arith.constant 0 : index
    %9 = vector.load %arg2[%c0_9, %c0_10, %c0_11, %c0_12] : memref<1x6x16x16xbf16, #tpu.memory_space<vmem>>, vector<1x1x16x16xbf16>
    %10 = vector.shape_cast %9 : vector<1x1x16x16xbf16> to vector<16x16xbf16>
    %11 = arith.extf %10 : vector<16x16xbf16> to vector<16x16xf32>
    %12 = vector.extract_strided_slice %4 {offsets = [0, 0], sizes = [1, 1], strides = [1, 1]} : vector<2x6xf32> to vector<1x1xf32>
    %13 = vector.broadcast %12 : vector<1x1xf32> to vector<16x16xf32>
    %14 = arith.mulf %11, %13 : vector<16x16xf32>
    %15 = arith.addf %8, %14 : vector<16x16xf32>
    %c0_13 = arith.constant 0 : index
    %c1 = arith.constant 1 : index
    %c0_14 = arith.constant 0 : index
    %c0_15 = arith.constant 0 : index
    %16 = vector.load %arg2[%c0_13, %c1, %c0_14, %c0_15] : memref<1x6x16x16xbf16, #tpu.memory_space<vmem>>, vector<1x1x16x16xbf16>
    %17 = vector.shape_cast %16 : vector<1x1x16x16xbf16> to vector<16x16xbf16>
    %18 = arith.extf %17 : vector<16x16xbf16> to vector<16x16xf32>
    %19 = vector.extract_strided_slice %4 {offsets = [0, 1], sizes = [1, 1], strides = [1, 1]} : vector<2x6xf32> to vector<1x1xf32>
    %20 = vector.broadcast %19 : vector<1x1xf32> to vector<16x16xf32>
    %21 = arith.mulf %18, %20 : vector<16x16xf32>
    %22 = arith.addf %15, %21 : vector<16x16xf32>
    %c0_16 = arith.constant 0 : index
    %c2 = arith.constant 2 : index
    %c0_17 = arith.constant 0 : index
    %c0_18 = arith.constant 0 : index
    %23 = vector.load %arg2[%c0_16, %c2, %c0_17, %c0_18] : memref<1x6x16x16xbf16, #tpu.memory_space<vmem>>, vector<1x1x16x16xbf16>
    %24 = vector.shape_cast %23 : vector<1x1x16x16xbf16> to vector<16x16xbf16>
    %25 = arith.extf %24 : vector<16x16xbf16> to vector<16x16xf32>
    %26 = vector.extract_strided_slice %4 {offsets = [0, 2], sizes = [1, 1], strides = [1, 1]} : vector<2x6xf32> to vector<1x1xf32>
    %27 = vector.broadcast %26 : vector<1x1xf32> to vector<16x16xf32>
    %28 = arith.mulf %25, %27 : vector<16x16xf32>
    %29 = arith.addf %22, %28 : vector<16x16xf32>
    %c0_19 = arith.constant 0 : index
    %c3 = arith.constant 3 : index
    %c0_20 = arith.constant 0 : index
    %c0_21 = arith.constant 0 : index
    %30 = vector.load %arg2[%c0_19, %c3, %c0_20, %c0_21] : memref<1x6x16x16xbf16, #tpu.memory_space<vmem>>, vector<1x1x16x16xbf16>
    %31 = vector.shape_cast %30 : vector<1x1x16x16xbf16> to vector<16x16xbf16>
    %32 = arith.extf %31 : vector<16x16xbf16> to vector<16x16xf32>
    %33 = vector.extract_strided_slice %4 {offsets = [0, 3], sizes = [1, 1], strides = [1, 1]} : vector<2x6xf32> to vector<1x1xf32>
    %34 = vector.broadcast %33 : vector<1x1xf32> to vector<16x16xf32>
    %35 = arith.mulf %32, %34 : vector<16x16xf32>
    %36 = arith.addf %29, %35 : vector<16x16xf32>
    %c0_22 = arith.constant 0 : index
    %c4 = arith.constant 4 : index
    %c0_23 = arith.constant 0 : index
    %c0_24 = arith.constant 0 : index
    %37 = vector.load %arg2[%c0_22, %c4, %c0_23, %c0_24] : memref<1x6x16x16xbf16, #tpu.memory_space<vmem>>, vector<1x1x16x16xbf16>
    %38 = vector.shape_cast %37 : vector<1x1x16x16xbf16> to vector<16x16xbf16>
    %39 = arith.extf %38 : vector<16x16xbf16> to vector<16x16xf32>
    %40 = vector.extract_strided_slice %4 {offsets = [0, 4], sizes = [1, 1], strides = [1, 1]} : vector<2x6xf32> to vector<1x1xf32>
    %41 = vector.broadcast %40 : vector<1x1xf32> to vector<16x16xf32>
    %42 = arith.mulf %39, %41 : vector<16x16xf32>
    %43 = arith.addf %36, %42 : vector<16x16xf32>
    %c0_25 = arith.constant 0 : index
    %c5 = arith.constant 5 : index
    %c0_26 = arith.constant 0 : index
    %c0_27 = arith.constant 0 : index
    %44 = vector.load %arg2[%c0_25, %c5, %c0_26, %c0_27] : memref<1x6x16x16xbf16, #tpu.memory_space<vmem>>, vector<1x1x16x16xbf16>
    %45 = vector.shape_cast %44 : vector<1x1x16x16xbf16> to vector<16x16xbf16>
    %46 = arith.extf %45 : vector<16x16xbf16> to vector<16x16xf32>
    %47 = vector.extract_strided_slice %4 {offsets = [0, 5], sizes = [1, 1], strides = [1, 1]} : vector<2x6xf32> to vector<1x1xf32>
    %48 = vector.broadcast %47 : vector<1x1xf32> to vector<16x16xf32>
    %49 = arith.mulf %46, %48 : vector<16x16xf32>
    %50 = arith.addf %43, %49 : vector<16x16xf32>
    %c0_28 = arith.constant 0 : index
    %c0_29 = arith.constant 0 : index
    %c0_30 = arith.constant 0 : index
    %c0_31 = arith.constant 0 : index
    %51 = vector.load %arg6[%c0_28, %c0_29, %c0_30, %c0_31] : memref<1x2x16x16xf32, #tpu.memory_space<vmem>>, vector<1x1x16x16xf32>
    %52 = vector.shape_cast %51 : vector<1x1x16x16xf32> to vector<16x16xf32>
    %53 = vector.shape_cast %50 : vector<16x16xf32> to vector<1x1x16x16xf32>
    tpu.vector_store %arg6[%c0_28, %c0_29, %c0_30, %c0_31], %53 {strides = array<i32>} : memref<1x2x16x16xf32, #tpu.memory_space<vmem>>, vector<1x1x16x16xf32>,
    %c0_32 = arith.constant 0 : index
    %c0_33 = arith.constant 0 : index
    %54 = vector.load %arg4[%c0_32, %c0_33] : memref<16x4xbf16, #tpu.memory_space<vmem>>, vector<16x4xbf16>
    %55 = vector.extract_strided_slice %3 {offsets = [4, 0], sizes = [4, 16], strides = [1, 1]} : vector<8x16xf32> to vector<4x16xf32>
    %56 = arith.truncf %55 : vector<4x16xf32> to vector<4x16xbf16>
    %cst_34 = arith.constant dense<0.000000e+00> : vector<16x16xf32>
    %57 = tpu.matmul %54, %56, %cst_34 {dimension_numbers = #tpu.dot_dimension_numbers<[1], [0], [0], [1], [0, 0, 1, 1], [], []>} : vector<16x4xbf16>, vector<4x16xbf16>, vector<16x16xf32> -> vector<16x16xf32>
    %c0_35 = arith.constant 0 : index
    %c0_36 = arith.constant 0 : index
    %c0_37 = arith.constant 0 : index
    %c0_38 = arith.constant 0 : index
    %58 = vector.load %arg2[%c0_35, %c0_36, %c0_37, %c0_38] : memref<1x6x16x16xbf16, #tpu.memory_space<vmem>>, vector<1x1x16x16xbf16>
    %59 = vector.shape_cast %58 : vector<1x1x16x16xbf16> to vector<16x16xbf16>
    %60 = arith.extf %59 : vector<16x16xbf16> to vector<16x16xf32>
    %61 = vector.extract_strided_slice %4 {offsets = [1, 0], sizes = [1, 1], strides = [1, 1]} : vector<2x6xf32> to vector<1x1xf32>
    %62 = vector.broadcast %61 : vector<1x1xf32> to vector<16x16xf32>
    %63 = arith.mulf %60, %62 : vector<16x16xf32>
    %64 = arith.addf %57, %63 : vector<16x16xf32>
    %c0_39 = arith.constant 0 : index
    %c1_40 = arith.constant 1 : index
    %c0_41 = arith.constant 0 : index
    %c0_42 = arith.constant 0 : index
    %65 = vector.load %arg2[%c0_39, %c1_40, %c0_41, %c0_42] : memref<1x6x16x16xbf16, #tpu.memory_space<vmem>>, vector<1x1x16x16xbf16>
    %66 = vector.shape_cast %65 : vector<1x1x16x16xbf16> to vector<16x16xbf16>
    %67 = arith.extf %66 : vector<16x16xbf16> to vector<16x16xf32>
    %68 = vector.extract_strided_slice %4 {offsets = [1, 1], sizes = [1, 1], strides = [1, 1]} : vector<2x6xf32> to vector<1x1xf32>
    %69 = vector.broadcast %68 : vector<1x1xf32> to vector<16x16xf32>
    %70 = arith.mulf %67, %69 : vector<16x16xf32>
    %71 = arith.addf %64, %70 : vector<16x16xf32>
    %c0_43 = arith.constant 0 : index
    %c2_44 = arith.constant 2 : index
    %c0_45 = arith.constant 0 : index
    %c0_46 = arith.constant 0 : index
    %72 = vector.load %arg2[%c0_43, %c2_44, %c0_45, %c0_46] : memref<1x6x16x16xbf16, #tpu.memory_space<vmem>>, vector<1x1x16x16xbf16>
    %73 = vector.shape_cast %72 : vector<1x1x16x16xbf16> to vector<16x16xbf16>
    %74 = arith.extf %73 : vector<16x16xbf16> to vector<16x16xf32>
    %75 = vector.extract_strided_slice %4 {offsets = [1, 2], sizes = [1, 1], strides = [1, 1]} : vector<2x6xf32> to vector<1x1xf32>
    %76 = vector.broadcast %75 : vector<1x1xf32> to vector<16x16xf32>
    %77 = arith.mulf %74, %76 : vector<16x16xf32>
    %78 = arith.addf %71, %77 : vector<16x16xf32>
    %c0_47 = arith.constant 0 : index
    %c3_48 = arith.constant 3 : index
    %c0_49 = arith.constant 0 : index
    %c0_50 = arith.constant 0 : index
    %79 = vector.load %arg2[%c0_47, %c3_48, %c0_49, %c0_50] : memref<1x6x16x16xbf16, #tpu.memory_space<vmem>>, vector<1x1x16x16xbf16>
    %80 = vector.shape_cast %79 : vector<1x1x16x16xbf16> to vector<16x16xbf16>
    %81 = arith.extf %80 : vector<16x16xbf16> to vector<16x16xf32>
    %82 = vector.extract_strided_slice %4 {offsets = [1, 3], sizes = [1, 1], strides = [1, 1]} : vector<2x6xf32> to vector<1x1xf32>
    %83 = vector.broadcast %82 : vector<1x1xf32> to vector<16x16xf32>
    %84 = arith.mulf %81, %83 : vector<16x16xf32>
    %85 = arith.addf %78, %84 : vector<16x16xf32>
    %c0_51 = arith.constant 0 : index
    %c4_52 = arith.constant 4 : index
    %c0_53 = arith.constant 0 : index
    %c0_54 = arith.constant 0 : index
    %86 = vector.load %arg2[%c0_51, %c4_52, %c0_53, %c0_54] : memref<1x6x16x16xbf16, #tpu.memory_space<vmem>>, vector<1x1x16x16xbf16>
    %87 = vector.shape_cast %86 : vector<1x1x16x16xbf16> to vector<16x16xbf16>
    %88 = arith.extf %87 : vector<16x16xbf16> to vector<16x16xf32>
    %89 = vector.extract_strided_slice %4 {offsets = [1, 4], sizes = [1, 1], strides = [1, 1]} : vector<2x6xf32> to vector<1x1xf32>
    %90 = vector.broadcast %89 : vector<1x1xf32> to vector<16x16xf32>
    %91 = arith.mulf %88, %90 : vector<16x16xf32>
    %92 = arith.addf %85, %91 : vector<16x16xf32>
    %c0_55 = arith.constant 0 : index
    %c5_56 = arith.constant 5 : index
    %c0_57 = arith.constant 0 : index
    %c0_58 = arith.constant 0 : index
    %93 = vector.load %arg2[%c0_55, %c5_56, %c0_57, %c0_58] : memref<1x6x16x16xbf16, #tpu.memory_space<vmem>>, vector<1x1x16x16xbf16>
    %94 = vector.shape_cast %93 : vector<1x1x16x16xbf16> to vector<16x16xbf16>
    %95 = arith.extf %94 : vector<16x16xbf16> to vector<16x16xf32>
    %96 = vector.extract_strided_slice %4 {offsets = [1, 5], sizes = [1, 1], strides = [1, 1]} : vector<2x6xf32> to vector<1x1xf32>
    %97 = vector.broadcast %96 : vector<1x1xf32> to vector<16x16xf32>
    %98 = arith.mulf %95, %97 : vector<16x16xf32>
    %99 = arith.addf %92, %98 : vector<16x16xf32>
    %c0_59 = arith.constant 0 : index
    %c1_60 = arith.constant 1 : index
    %c0_61 = arith.constant 0 : index
    %c0_62 = arith.constant 0 : index
    %100 = vector.load %arg6[%c0_59, %c1_60, %c0_61, %c0_62] : memref<1x2x16x16xf32, #tpu.memory_space<vmem>>, vector<1x1x16x16xf32>
    %101 = vector.shape_cast %100 : vector<1x1x16x16xf32> to vector<16x16xf32>
    %102 = vector.shape_cast %99 : vector<16x16xf32> to vector<1x1x16x16xf32>
    tpu.vector_store %arg6[%c0_59, %c1_60, %c0_61, %c0_62], %102 {strides = array<i32>} : memref<1x2x16x16xf32, #tpu.memory_space<vmem>>, vector<1x1x16x16xf32>,
    return
  }
  func.func @transform_0(%arg0: i32) -> (i32, i32, i32) {
    %c0_i32 = arith.constant 0 : i32
    %c0_i32_0 = arith.constant 0 : i32
    %c0_i32_1 = arith.constant 0 : i32
    return %arg0, %c0_i32, %c0_i32_0 : i32, i32, i32
  }
  func.func @transform_1(%arg0: i32) -> (i32, i32, i32, i32) {
    %c0_i32 = arith.constant 0 : i32
    %c0_i32_0 = arith.constant 0 : i32
    %c0_i32_1 = arith.constant 0 : i32
    %c0_i32_2 = arith.constant 0 : i32
    return %arg0, %c0_i32, %c0_i32_0, %c0_i32_1 : i32, i32, i32, i32
  }
  func.func @transform_2(%arg0: i32) -> (i32, i32) {
    %c0_i32 = arith.constant 0 : i32
    %c0_i32_0 = arith.constant 0 : i32
    %c0_i32_1 = arith.constant 0 : i32
    return %c0_i32, %c0_i32_0 : i32, i32
  }
  func.func @transform_3(%arg0: i32) -> (i32, i32) {
    %c0_i32 = arith.constant 0 : i32
    %c0_i32_0 = arith.constant 0 : i32
    %c0_i32_1 = arith.constant 0 : i32
    return %c0_i32, %c0_i32_0 : i32, i32
  }
  func.func @transform_4(%arg0: i32) -> (i32, i32) {
    %c0_i32 = arith.constant 0 : i32
    %c0_i32_0 = arith.constant 0 : i32
    %c0_i32_1 = arith.constant 0 : i32
    return %c0_i32, %c0_i32_0 : i32, i32
  }
  func.func @transform_5(%arg0: i32) -> (i32, i32, i32, i32) {
    %c0_i32 = arith.constant 0 : i32
    %c0_i32_0 = arith.constant 0 : i32
    %c0_i32_1 = arith.constant 0 : i32
    %c0_i32_2 = arith.constant 0 : i32
    return %arg0, %c0_i32, %c0_i32_0, %c0_i32_1 : i32, i32, i32, i32
  }
}

module attributes {stable_mosaic.version = 11 : i64} {
  func.func @coarse_stage_kernel(%arg0: i32, %arg1: memref<1x48x32xbf16, #tpu.memory_space<vmem>>, %arg2: memref<32x48xbf16, #tpu.memory_space<vmem>>, %arg3: memref<32x1xf32, #tpu.memory_space<vmem>>, %arg4: memref<8x32xbf16, #tpu.memory_space<vmem>>, %arg5: memref<8x32xf32, #tpu.memory_space<vmem>>, %arg6: memref<2x8xbf16, #tpu.memory_space<vmem>>, %arg7: memref<2x8xbf16, #tpu.memory_space<vmem>>, %arg8: memref<2x1xf32, #tpu.memory_space<vmem>>, %arg9: memref<1x2x16xbf16, #tpu.memory_space<vmem>>) attributes {dimension_semantics = [#tpu.dimension_semantics<parallel>], iteration_bounds = array<i64: 2>, scalar_prefetch = 0 : i64, scratch_operands = 0 : i64, tpu.core_type = #tpu.core_type<tc>, window_params = [{transform_indices = @transform_0, window_bounds = array<i64: 1, 48, 32>}, {pipeline_mode = #tpu.pipeline_mode<synchronous>, transform_indices = @transform_1, window_bounds = array<i64: 32, 48>}, {pipeline_mode = #tpu.pipeline_mode<synchronous>, transform_indices = @transform_2, window_bounds = array<i64: 32, 1>}, {pipeline_mode = #tpu.pipeline_mode<synchronous>, transform_indices = @transform_3, window_bounds = array<i64: 8, 32>}, {pipeline_mode = #tpu.pipeline_mode<synchronous>, transform_indices = @transform_4, window_bounds = array<i64: 8, 32>}, {pipeline_mode = #tpu.pipeline_mode<synchronous>, transform_indices = @transform_5, window_bounds = array<i64: 2, 8>}, {pipeline_mode = #tpu.pipeline_mode<synchronous>, transform_indices = @transform_6, window_bounds = array<i64: 2, 8>}, {pipeline_mode = #tpu.pipeline_mode<synchronous>, transform_indices = @transform_7, window_bounds = array<i64: 2, 1>}, {transform_indices = @transform_8, window_bounds = array<i64: 1, 2, 16>}]} {
    %c0 = arith.constant 0 : index
    %c0_0 = arith.constant 0 : index
    %0 = vector.load %arg2[%c0, %c0_0] : memref<32x48xbf16, #tpu.memory_space<vmem>>, vector<32x48xbf16>
    %c0_1 = arith.constant 0 : index
    %c0_2 = arith.constant 0 : index
    %c0_3 = arith.constant 0 : index
    %1 = vector.load %arg1[%c0_1, %c0_2, %c0_3] : memref<1x48x32xbf16, #tpu.memory_space<vmem>>, vector<1x48x32xbf16>
    %2 = vector.shape_cast %1 : vector<1x48x32xbf16> to vector<48x32xbf16>
    %cst = arith.constant dense<0.000000e+00> : vector<32x32xf32>
    %3 = tpu.matmul %0, %2, %cst {dimension_numbers = #tpu.dot_dimension_numbers<[1], [0], [0], [1], [0, 0, 1, 1], [], []>} : vector<32x48xbf16>, vector<48x32xbf16>, vector<32x32xf32> -> vector<32x32xf32>
    %c0_4 = arith.constant 0 : index
    %c0_5 = arith.constant 0 : index
    %4 = vector.load %arg3[%c0_4, %c0_5] : memref<32x1xf32, #tpu.memory_space<vmem>>, vector<32x1xf32>
    %5 = vector.broadcast %4 : vector<32x1xf32> to vector<32x32xf32>
    %6 = arith.addf %3, %5 : vector<32x32xf32>
    %7 = vector.extract_strided_slice %6 {offsets = [0, 0], sizes = [32, 16], strides = [1, 1]} : vector<32x32xf32> to vector<32x16xf32>
    %8 = vector.extract_strided_slice %6 {offsets = [0, 16], sizes = [32, 16], strides = [1, 1]} : vector<32x32xf32> to vector<32x16xf32>
    %9 = arith.subf %7, %8 : vector<32x16xf32>
    %10 = arith.truncf %9 : vector<32x16xf32> to vector<32x16xbf16>
    %c0_6 = arith.constant 0 : index
    %c0_7 = arith.constant 0 : index
    %11 = vector.load %arg4[%c0_6, %c0_7] : memref<8x32xbf16, #tpu.memory_space<vmem>>, vector<8x32xbf16>
    %cst_8 = arith.constant dense<0.000000e+00> : vector<8x16xf32>
    %12 = tpu.matmul %11, %10, %cst_8 {dimension_numbers = #tpu.dot_dimension_numbers<[1], [0], [0], [1], [0, 0, 1, 1], [], []>} : vector<8x32xbf16>, vector<32x16xbf16>, vector<8x16xf32> -> vector<8x16xf32>
    %cst_9 = arith.constant 0.176776692 : f32
    %13 = vector.broadcast %cst_9 : f32 to vector<8x16xf32>
    %14 = arith.mulf %12, %13 : vector<8x16xf32>
    %cst_10 = arith.constant dense<0xFF800000> : vector<8xf32>
    %15 = vector.multi_reduction <maximumf>, %14, %cst_10 [1] : vector<8x16xf32> to vector<8xf32>
    %16 = vector.shape_cast %15 : vector<8xf32> to vector<8x1xf32>
    %17 = vector.broadcast %16 : vector<8x1xf32> to vector<8x16xf32>
    %18 = arith.subf %14, %17 : vector<8x16xf32>
    %19 = math.exp %18 : vector<8x16xf32>
    %cst_11 = arith.constant dense<0.000000e+00> : vector<8xf32>
    %20 = vector.multi_reduction <add>, %19, %cst_11 [1] : vector<8x16xf32> to vector<8xf32>
    %21 = vector.shape_cast %20 : vector<8xf32> to vector<8x1xf32>
    %22 = tpu.reciprocal %21 {approx = true} : vector<8x1xf32> -> vector<8x1xf32>
    %23 = vector.broadcast %22 : vector<8x1xf32> to vector<8x16xf32>
    %24 = arith.mulf %19, %23 : vector<8x16xf32>
    %25 = arith.truncf %24 : vector<8x16xf32> to vector<8x16xbf16>
    %cst_12 = arith.constant dense<0.000000e+00> : vector<8x32xf32>
    %26 = tpu.matmul %25, %10, %cst_12 {dimension_numbers = #tpu.dot_dimension_numbers<[1], [1], [0], [0], [0, 0, 1, 0], [], []>} : vector<8x16xbf16>, vector<32x16xbf16>, vector<8x32xf32> -> vector<8x32xf32>
    %c0_13 = arith.constant 0 : index
    %c0_14 = arith.constant 0 : index
    %27 = vector.load %arg5[%c0_13, %c0_14] : memref<8x32xf32, #tpu.memory_space<vmem>>, vector<8x32xf32>
    %28 = arith.addf %27, %26 : vector<8x32xf32>
    %29 = arith.truncf %28 : vector<8x32xf32> to vector<8x32xbf16>
    %30 = arith.truncf %6 : vector<32x32xf32> to vector<32x32xbf16>
    %cst_15 = arith.constant dense<0.000000e+00> : vector<8x32xf32>
    %31 = tpu.matmul %29, %30, %cst_15 {dimension_numbers = #tpu.dot_dimension_numbers<[1], [0], [0], [1], [0, 0, 1, 1], [], []>} : vector<8x32xbf16>, vector<32x32xbf16>, vector<8x32xf32> -> vector<8x32xf32>
    %cst_16 = arith.constant dense<0xFF800000> : vector<32xf32>
    %32 = vector.multi_reduction <maximumf>, %31, %cst_16 [0] : vector<8x32xf32> to vector<32xf32>
    %33 = vector.shape_cast %32 : vector<32xf32> to vector<1x32xf32>
    %34 = vector.broadcast %33 : vector<1x32xf32> to vector<8x32xf32>
    %35 = arith.subf %31, %34 : vector<8x32xf32>
    %36 = math.exp %35 : vector<8x32xf32>
    %cst_17 = arith.constant dense<0.000000e+00> : vector<32xf32>
    %37 = vector.multi_reduction <add>, %36, %cst_17 [0] : vector<8x32xf32> to vector<32xf32>
    %38 = vector.shape_cast %37 : vector<32xf32> to vector<1x32xf32>
    %39 = tpu.reciprocal %38 {approx = true} : vector<1x32xf32> -> vector<1x32xf32>
    %40 = vector.broadcast %39 : vector<1x32xf32> to vector<8x32xf32>
    %41 = arith.mulf %36, %40 : vector<8x32xf32>
    %42 = arith.truncf %41 : vector<8x32xf32> to vector<8x32xbf16>
    %c0_18 = arith.constant 0 : index
    %c0_19 = arith.constant 0 : index
    %43 = vector.load %arg6[%c0_18, %c0_19] : memref<2x8xbf16, #tpu.memory_space<vmem>>, vector<2x8xbf16>
    %44 = vector.extract_strided_slice %42 {offsets = [0, 0], sizes = [8, 16], strides = [1, 1]} : vector<8x32xbf16> to vector<8x16xbf16>
    %cst_20 = arith.constant dense<0.000000e+00> : vector<2x16xf32>
    %45 = tpu.matmul %43, %44, %cst_20 {dimension_numbers = #tpu.dot_dimension_numbers<[1], [0], [0], [1], [0, 0, 1, 1], [], []>} : vector<2x8xbf16>, vector<8x16xbf16>, vector<2x16xf32> -> vector<2x16xf32>
    %c0_21 = arith.constant 0 : index
    %c0_22 = arith.constant 0 : index
    %46 = vector.load %arg7[%c0_21, %c0_22] : memref<2x8xbf16, #tpu.memory_space<vmem>>, vector<2x8xbf16>
    %47 = vector.extract_strided_slice %42 {offsets = [0, 16], sizes = [8, 16], strides = [1, 1]} : vector<8x32xbf16> to vector<8x16xbf16>
    %cst_23 = arith.constant dense<0.000000e+00> : vector<2x16xf32>
    %48 = tpu.matmul %46, %47, %cst_23 {dimension_numbers = #tpu.dot_dimension_numbers<[1], [0], [0], [1], [0, 0, 1, 1], [], []>} : vector<2x8xbf16>, vector<8x16xbf16>, vector<2x16xf32> -> vector<2x16xf32>
    %49 = arith.addf %45, %48 : vector<2x16xf32>
    %c0_24 = arith.constant 0 : index
    %c0_25 = arith.constant 0 : index
    %50 = vector.load %arg8[%c0_24, %c0_25] : memref<2x1xf32, #tpu.memory_space<vmem>>, vector<2x1xf32>
    %51 = vector.broadcast %50 : vector<2x1xf32> to vector<2x16xf32>
    %52 = arith.addf %49, %51 : vector<2x16xf32>
    %53 = arith.truncf %52 : vector<2x16xf32> to vector<2x16xbf16>
    %c0_26 = arith.constant 0 : index
    %c0_27 = arith.constant 0 : index
    %c0_28 = arith.constant 0 : index
    %54 = vector.load %arg9[%c0_26, %c0_27, %c0_28] : memref<1x2x16xbf16, #tpu.memory_space<vmem>>, vector<1x2x16xbf16>
    %55 = vector.shape_cast %54 : vector<1x2x16xbf16> to vector<2x16xbf16>
    %56 = vector.shape_cast %53 : vector<2x16xbf16> to vector<1x2x16xbf16>
    tpu.vector_store %arg9[%c0_26, %c0_27, %c0_28], %56 {strides = array<i32>} : memref<1x2x16xbf16, #tpu.memory_space<vmem>>, vector<1x2x16xbf16>,
    return
  }
  func.func @transform_0(%arg0: i32) -> (i32, i32, i32) {
    %c0_i32 = arith.constant 0 : i32
    %c0_i32_0 = arith.constant 0 : i32
    %c0_i32_1 = arith.constant 0 : i32
    return %arg0, %c0_i32, %c0_i32_0 : i32, i32, i32
  }
  func.func @transform_1(%arg0: i32) -> (i32, i32) {
    %c0_i32 = arith.constant 0 : i32
    %c0_i32_0 = arith.constant 0 : i32
    %c0_i32_1 = arith.constant 0 : i32
    return %c0_i32, %c0_i32_0 : i32, i32
  }
  func.func @transform_2(%arg0: i32) -> (i32, i32) {
    %c0_i32 = arith.constant 0 : i32
    %c0_i32_0 = arith.constant 0 : i32
    %c0_i32_1 = arith.constant 0 : i32
    return %c0_i32, %c0_i32_0 : i32, i32
  }
  func.func @transform_3(%arg0: i32) -> (i32, i32) {
    %c0_i32 = arith.constant 0 : i32
    %c0_i32_0 = arith.constant 0 : i32
    %c0_i32_1 = arith.constant 0 : i32
    return %c0_i32, %c0_i32_0 : i32, i32
  }
  func.func @transform_4(%arg0: i32) -> (i32, i32) {
    %c0_i32 = arith.constant 0 : i32
    %c0_i32_0 = arith.constant 0 : i32
    %c0_i32_1 = arith.constant 0 : i32
    return %c0_i32, %c0_i32_0 : i32, i32
  }
  func.func @transform_5(%arg0: i32) -> (i32, i32) {
    %c0_i32 = arith.constant 0 : i32
    %c0_i32_0 = arith.constant 0 : i32
    %c0_i32_1 = arith.constant 0 : i32
    return %c0_i32, %c0_i32_0 : i32, i32
  }
  func.func @transform_6(%arg0: i32) -> (i32, i32) {
    %c0_i32 = arith.constant 0 : i32
    %c0_i32_0 = arith.constant 0 : i32
    %c0_i32_1 = arith.constant 0 : i32
    return %c0_i32, %c0_i32_0 : i32, i32
  }
  func.func @transform_7(%arg0: i32) -> (i32, i32) {
    %c0_i32 = arith.constant 0 : i32
    %c0_i32_0 = arith.constant 0 : i32
    %c0_i32_1 = arith.constant 0 : i32
    return %c0_i32, %c0_i32_0 : i32, i32
  }
  func.func @transform_8(%arg0: i32) -> (i32, i32, i32) {
    %c0_i32 = arith.constant 0 : i32
    %c0_i32_0 = arith.constant 0 : i32
    %c0_i32_1 = arith.constant 0 : i32
    return %arg0, %c0_i32, %c0_i32_0 : i32, i32, i32
  }
}

</mosaic_0001>

<bundles_post_ra>
// kernel: strobustnet_forward.2
= control target key start
LH: loop header
LB: loop body
LE: loop exit
PB: predicated region body
PF: predicated region fallthrough
CT: control target
= control target key end

     0   :  { %s728_s27 = smov 0   ;;  %s796_s0 = inlined_call_operand.vmem [shape: bf16[2,48,32], index: 0, kind: input, shape index: {}]   ;;  %s797_s1 = inlined_call_operand.vmem [shape: bf16[32,48], index: 1, kind: input, shape index: {}]   ;;  %s798_s2 = inlined_call_operand.vmem [shape: f32[32,1], index: 2, kind: input, shape index: {}]   ;;  %s799_s3 = inlined_call_operand.vmem [shape: bf16[8,32], index: 3, kind: input, shape index: {}]   ;;  %s800_s4 = inlined_call_operand.vmem [shape: f32[8,32], index: 4, kind: input, shape index: {}]   ;;  %s801_s5 = inlined_call_operand.vmem [shape: bf16[2,8], index: 5, kind: input, shape index: {}]   ;;  %s802_s6 = inlined_call_operand.vmem [shape: bf16[2,8], index: 6, kind: input, shape index: {}]   ;;  %s803_s7 = inlined_call_operand.vmem [shape: f32[2,1], index: 7, kind: input, shape index: {}]   ;;  %s804_s8 = inlined_call_operand.vmem [shape: bf16[2,2,16], index: 8, kind: output, shape index: {}]  }
   0x1 LB: > { %s612_s28 = sadd.s32 4294967295, %s679_s27   ;;  %p616_p0 = scmp.ge.s32.totalorder %s679_s27, 1  ;;  %s679_s27 = sphi %s728_s27, %s18_s27  }
   0x2   : > { %p262_p1 = scmp.lt.s32.totalorder %s679_s27, 3 }
   0x4   : > { %p263_p2 = pnand %p616_p0, %p262_p1 }
   0x5   : > { %p294_p3 = scmp.lt.s32.totalorder (!%p263_p2), %s612_s28, 1  ;;  %s682_s23 = smov (!%p263_p2), 112  }
   0x6   : > { %266 = sbr.rel (%p263_p2) target bundleno = 1242 (0x4da), region = 52 }
   0xb   : > { %v313_v0 = vld [vmem:[%s798_s2] sm:$0xff]  ;;  %v681_v1 = vmov 0   ;;  %s806_s28 = smov (!%p294_p3, %s612_s28), 1  ;;  %v315_v2 = vld [vmem:[%s798_s2 + $0x10] sm:$0xff]  ;;  %v314_v4 = vld [vmem:[%s798_s2 + $0x8] sm:$0xff]  ;;  %vm365_vm0 = vcmask 392192  }
   0xc   : > { %664 = vset.pattern.permute.xlu1 %v681_v1  ;;  %663 = vset.pattern.permute.xlu0 %v681_v1  ;;  %s652_s9 = smul.u32 24, %s806_s28  ;;  %v316_v6 = vld [vmem:[%s798_s2 + $0x18] sm:$0xff]  ;;  %v647_v8 = vld [vmem:[%s797_s1] sm:$0xff]  ;;  %v648_v9 = vld [vmem:[%s797_s1 + $0x8] sm:$0xff]  ;;  %vm432_vm1 = vcmask 130048   ;;  %vm414_vm2 = vcmask 261120   ;;  %s301_s16 = scalar_lea.vmem %s804_s8, %s806_s28 }
   0xd   : > { %319 = vperm.xlu1 %664, %v313_v0   ;;  %329 = vperm.xlu0 %663, %v315_v2   ;;  %v413_v36 = vld [vmem:[%s799_s3] sm:$0xf]  ;;  %vm519_vm3 = vcmask 1043456   ;;  %vm515_vm4 = vcmask 64512   ;;  %vm563_vm5 = vcmask 122880  }
   0xe   : > { %s298_s14 = scalar_lea.vmem %s796_s0, %s652_s9  ;;  %v467_v50 = vld [vmem:[%s800_s4] sm:$0xff] }
   0xf   : > { %v651_v3 = vld [vmem:[%s298_s14 + $0x10] sm:$0xff]  ;;  %v650_v5 = vld [vmem:[%s298_s14 + $0x8] sm:$0xff]  ;;  %v649_v7 = vld [vmem:[%s298_s14] sm:$0xff] }
  0x10   : > { %377 = vmatpush.bf16.msra.mxu0 %v651_v3 }
  0x14   : > { %378 = vmatpush.bf16.msra.mxu0 %v650_v5 }
  0x15   : > { %324 = vperm.xlu1 %664, %v314_v4   ;;  %334 = vperm.xlu0 %663, %v316_v6  }
  0x18   : > { %379 = vmatpush.bf16.msra.mxu0 %v649_v7 }
  0x1b   : > { %638 = vmatmul.msk.bf16.vlgmr.msra.gmra.mxu0 %vm365_vm0, %v647_v8 }
  0x2b   : > { %639 = vmatmul.msk.bf16.gmra.mxu0 %vm365_vm0, %v648_v9 }
  0x7f   : > { %v320_v10 = vpop.permute.xlu1 %319  ;;  %v330_v16 = vpop.permute.xlu0 %329 }
  0x87   : > { %v325_v13 = vpop.permute.xlu1 %324  ;;  %v335_v19 = vpop.permute.xlu0 %334 }
  0x98   : > { %v381_v11 = vpop.f32.mrf.mxu0 }
  0x99   : > { %v382_v12 = vadd.f32 %v381_v11, %v320_v10 }
  0x9b   : > { %395 = vrot.lane.b32.xlu0 %v382_v12, %s682_s23 }
  0xa0   : > { %v383_v14 = vpop.f32.mrf.mxu0 }
  0xa1   : > { %v384_v15 = vadd.f32 %v383_v14, %v325_v13 }
  0xa3   : > { %397 = vrot.lane.b32.xlu1 %v384_v15, %s682_s23  ;;  %v470_v23 = vpack.c.bf16 %v384_v15, %v382_v12 }
  0xa8   : > { %v386_v17 = vpop.f32.mrf.mxu0 }
  0xa9   : > { %v387_v18 = vadd.f32 %v386_v17, %v330_v16  ;;  %v555_v17 = vld [vmem:[%s803_s7] sm:$0x3] }
  0xab   : > { %399 = vrot.lane.b32.xlu2 %v387_v18, %s682_s23 }
  0xb0   : > { %v388_v20 = vpop.f32.mrf.mxu0 }
  0xb1   : > { %v389_v21 = vadd.f32 %v388_v20, %v335_v19  ;;  %v509_v20 = vld [vmem:[%s802_s6] sm:$0x1] }
  0xb3   : > { %401 = vrot.lane.b32.xlu2 %v389_v21, %s682_s23  ;;  %v471_v22 = vpack.c.bf16 %v389_v21, %v387_v18 }
  0xb5   : > { %481 = vmatpush.bf16.msra.mxu3 %v471_v22 }
  0xb9   : > { %482 = vmatpush.bf16.msra.mxu3 %v470_v23 }
 0x105   : > { %v400_v24 = vpop.permute.xlu2 %399 }
 0x106   : > { %v409_v26 = vsub.f32 %v387_v18, %v400_v24 }
 0x10d   : > { %v402_v25 = vpop.permute.xlu2 %401  ;;  %v396_v30 = vpop.permute.xlu0 %395 }
 0x10e   : > { %v410_v27 = vsub.f32 %v389_v21, %v402_v25  ;;  %v407_v32 = vsub.f32 %v382_v12, %v396_v30 }
 0x110   : > { %v412_v28 = vpack.c.bf16 %v410_v27, %v409_v26 }
 0x112   : > { %424 = vmatpush.bf16.msra.mxu1 %v412_v28  ;;  %v452_v29 = vsel %vm432_vm1, %v412_v28, 0 }
 0x113   : > { %460 = vmatpush.bf16.xpose.msra.mxu2 %v452_v29 }
 0x115   : > { %v398_v31 = vpop.permute.xlu1 %397 }
 0x116   : > { %v408_v33 = vsub.f32 %v384_v15, %v398_v31  ;;  %v508_v15 = vld [vmem:[%s801_s5] sm:$0x1] }
 0x118   : > { %v411_v34 = vpack.c.bf16 %v408_v33, %v407_v32 }
 0x11a   : > { %425 = vmatpush.bf16.msra.mxu1 %v411_v34  ;;  %v449_v35 = vsel %vm432_vm1, %v411_v34, 0 }
 0x11b   : > { %461 = vmatpush.bf16.xpose.msra.mxu2 %v449_v35 }
 0x11d   : > { %640 = vmatmul.msk.bf16.vlgmr.msra.gmra.mxu1 %vm414_vm2, %v413_v36 }
 0x19a   : > { %v427_v37 = vpop.f32.mrf.mxu1 }
 0x19b   : > { %v431_v38 = vmul.f32 0.17677669, %v427_v37 }
 0x19d   : > { %v433_v39 = vsel %vm432_vm1, %v431_v38, -inf }
 0x19e   : > { %434 = vmax.xlane.f32.xlu2 %v433_v39 }
 0x1a2   : > { %v429_v40 = vpop.f32.mrf.mxu1 }
 0x211   : > { %v435_v41 = vpop.xlane.xlu2 %434 }
 0x212   : > { %v436_v42 = vsub.f32 %v431_v38, %v435_v41 }
 0x214   : > { %v437_v43 = vmul.f32 1.442695, %v436_v42 }
 0x216   : > { %665 = vpow2.f32 %v437_v43 }
 0x21c   : > { %v666_v44 = vpop.eup %665 }
 0x21d   : > { %v439_v45 = vsel %vm432_vm1, %v666_v44, 0.0 }
 0x21e   : > { %440 = vadd.xlane.f32.xlu0 %v439_v45 }
 0x291   : > { %v441_v46 = vpop.xlane.xlu0 %440 }
 0x292   : > { %667 = vrcp.f32 %v441_v46 }
 0x298   : > { %v668_v47 = vpop.eup %667 }
 0x299   : > { %v443_v48 = vmul.f32 %v668_v47, %v666_v44 }
 0x29b   : > { %v444_v49 = vpack.c.bf16 %v443_v48, %v443_v48 }
 0x29d   : > { %641 = vmatmul.msk.bf16.vlgmr.msra.gmra.mxu2 %vm432_vm1, %v444_v49 }
 0x320   : > { %v463_v51 = vpop.f32.mrf.mxu2 }
 0x321   : > { %v468_v52 = vadd.f32 %v467_v50, %v463_v51 }
 0x323   : > { %v469_v53 = vpack.c.bf16 %v468_v52, %v468_v52 }
 0x325   : > { %642 = vmatmul.msk.bf16.vlgmr.msra.gmra.mxu3 %vm414_vm2, %v469_v53 }
 0x328   : > { %v465_v54 = vpop.f32.mrf.mxu2 }
 0x3a8   : > { %v484_v55 = vpop.f32.mrf.mxu3 }
 0x3a9   : > { %v488_v56 = vsel %vm414_vm2, %v484_v55, -inf }
 0x3aa   : > { %v489_v57 = vrot.slane %v488_v56, 4 }
 0x3ac   : > { %v490_v58 = vmax.f32 %v488_v56, %v489_v57 }
 0x3ae   : > { %v491_v59 = vrot.slane %v490_v58, 2 }
 0x3b0   : > { %v492_v60 = vmax.f32 %v490_v58, %v491_v59  ;;  %v486_v61 = vpop.f32.mrf.mxu3 }
 0x3b2   : > { %v493_v62 = vrot.slane %v492_v60, 1 }
 0x3b4   : > { %v494_v63 = vmax.f32 %v492_v60, %v493_v62 }
 0x3b6   : > { %v495_v0 = vsub.f32 %v484_v55, %v494_v63 }
 0x3b8   : > { %v496_v1 = vmul.f32 1.442695, %v495_v0 }
 0x3ba   : > { %669 = vpow2.f32 %v496_v1 }
 0x3c0   : > { %v670_v2 = vpop.eup %669 }
 0x3c1   : > { %v498_v3 = vsel %vm414_vm2, %v670_v2, 0.0 }
 0x3c2   : > { %v499_v4 = vrot.slane %v498_v3, 4 }
 0x3c4   : > { %v500_v5 = vadd.f32 %v499_v4, %v498_v3 }
 0x3c6   : > { %v501_v6 = vrot.slane %v500_v5, 2 }
 0x3c8   : > { %v502_v7 = vadd.f32 %v501_v6, %v500_v5 }
 0x3ca   : > { %v503_v8 = vrot.slane %v502_v7, 1 }
 0x3cc   : > { %v504_v9 = vadd.f32 %v503_v8, %v502_v7 }
 0x3ce   : > { %671 = vrcp.f32 %v504_v9 }
 0x3d4   : > { %v672_v10 = vpop.eup %671 }
 0x3d5   : > { %v506_v11 = vmul.f32 %v672_v10, %v670_v2 }
 0x3d7   : > { %v507_v12 = vpack.c.bf16 %v506_v11, %v506_v11 }
 0x3d9   : > { %v540_v13 = vsel %vm519_vm3, %v507_v12, 0  ;;  %v511_v14 = vunpack.c.l.b16 %v507_v12 }
 0x3da   : > { %549 = vmatpush.bf16.msrb.mxu3 %v540_v13 }
 0x3db   : > { %v512_v16 = vpack.c.b16 %v511_v14, %v511_v14 }
 0x3dd   : > { %513 = vrot.lane.b32.xlu1 %v512_v16, %s682_s23  ;;  %644 = vmatmul.msk.bf16.vlgmr.msrb.gmra.mxu3 %vm515_vm4, %v508_v15 }
 0x3e5   : > { %558 = vperm.xlu1 %664, %v555_v17  }
 0x44f   : > { %v514_v18 = vpop.permute.xlu1 %513 }
 0x450   : > { %v521_v19 = vsel %vm519_vm3, %v514_v18, 0 }
 0x451   : > { %530 = vmatpush.bf16.msrb.mxu1 %v521_v19 }
 0x454   : > { %643 = vmatmul.msk.bf16.vlgmr.msrb.gmra.mxu1 %vm515_vm4, %v509_v20 }
 0x457   : > { %v559_v25 = vpop.permute.xlu1 %558 }
 0x460   : > { %v551_v21 = vpop.f32.mrf.mxu3 }
 0x468   : > { %v553_v22 = vpop.f32.mrf.mxu3 }
 0x4d1   : > { %v532_v23 = vpop.f32.mrf.mxu1 }
 0x4d2   : > { %v552_v24 = vadd.f32 %v551_v21, %v532_v23 }
 0x4d4   : > { %v561_v26 = vadd.f32 %v559_v25, %v552_v24 }
 0x4d6   : > { %v562_v27 = vpack.c.bf16 %v561_v26, %v561_v26 }
 0x4d8   : > { %564 = vst.msk [vmem:[%s301_s16] sm:$0x1] %vm563_vm5, %v562_v27 }
 0x4d9   : > { %v534_v28 = vpop.f32.mrf.mxu1 }
 0x4da PF: > { %s18_s27 = sadd.s32 1, %s679_s27  }
 0x4db   : > { %p15_p4 = scmp.ge.s32.totalorder %s18_s27, 4  }
 0x4dd   :  { %17 = sbr.rel (!%p15_p4) target bundleno = 1 (0x1), region = 82 }

// kernel: strobustnet_forward.3
= control target key start
LH: loop header
LB: loop body
LE: loop exit
PB: predicated region body
PF: predicated region fallthrough
CT: control target
= control target key end

     0   :  { %10 = vsyncpa [#allocation3], 0  ;;  %s1036_s0 = inlined_call_operand.vmem [shape: bf16[2,8,4], index: 0, kind: input, shape index: {}]   ;;  %s1037_s1 = inlined_call_operand.vmem [shape: bf16[2,6,16,16], index: 1, kind: input, shape index: {}]   ;;  %s1038_s2 = inlined_call_operand.vmem [shape: bf16[4,16], index: 2, kind: input, shape index: {}]   ;;  %s1039_s3 = inlined_call_operand.vmem [shape: bf16[16,4], index: 3, kind: input, shape index: {}]   ;;  %s1040_s4 = inlined_call_operand.vmem [shape: f32[2,6], index: 4, kind: input, shape index: {}]   ;;  %s1041_s5 = inlined_call_operand.hbm [shape: f32[2,2,16,16], index: 5, kind: output, shape index: {}]  }
   0x1   :  { %12 = vsyncpa [#allocation3 + $0x1], 0  ;;  %s851_s18 = smov 0   ;;  %s853_s19 = smov 0  }
   0x2   :  { %s855_s20 = smov 0   ;;  %s857_s21 = smov 0  }
   0x3 LB: > { %s872_s22 = sadd.s32 4294967295, %s812_s21   ;;  %s573_s23 = sadd.s32 4294967294, %s812_s21   ;;  %s812_s21 = sphi %s857_s21, %s1047_s21   ;;  %s808_s20 = sphi %s855_s20, %s1046_s20   ;;  %s804_s19 = sphi %s853_s19, %s1045_s19   ;;  %s800_s18 = sphi %s851_s18, %s1044_s18  }
   0x4   : > { %s876_s24 = sadd.s32 1, %s812_s21   ;;  %s140_s25 = sadd.s32 1, %s808_s20 }
   0x5   : > { %s137_s26 = ssub.s32 %s812_s21, %s876_s24  ;;  %p150_p0 = scmp.ne.s32.totalorder %s808_s20, %s804_s19 }
   0x6   : > { %p138_p1 = scmp.eq.s32.totalorder %s137_s26, 0  ;;  %p151_p2 = scmp.eq.s32.totalorder %s872_s22, 1 }
   0x7   : > { %p156_p3 = scmp.ne.s32.totalorder %s804_s19, %s800_s18  ;;  %p157_p4 = scmp.eq.s32.totalorder %s573_s23, 1 }
   0x8   : > { %s887_s27 = scalar_select %p138_p1, %s808_s20, %s140_s25  }
   0x9   : > { %p889_p5 = por %p151_p2, %p150_p0  ;;  %p893_p6 = por %p157_p4, %p156_p3 }
   0xa   : > { %p576_p7 = scmp.ge.s32.totalorder %s812_s21, 1  ;;  %p199_p8 = scmp.lt.s32.totalorder %s812_s21, 3 }
   0xc   : > { %p200_p9 = pnand %p576_p7, %p199_p8 }
   0xd   : > { %p231_p10 = scmp.lt.s32.totalorder (!%p200_p9), %s872_s22, 1  ;;  %s814_s10 = smov (!%p200_p9), 127  }
   0xe   : > { %203 = sbr.rel (%p200_p9) target bundleno = 314 (0x13a), region = 40  ;;  %s815_s11 = smov (!%p200_p9), 125  }
   0xf   : > { %s816_s13 = smov (!%p200_p9), 123   ;;  %s817_s17 = smov (!%p200_p9), 126  }
  0x10   : > { %s818_s23 = smov (!%p200_p9), 124   ;;  %s228_s26 = sand.u32 (!%p200_p9), 1, %s804_s19  }
  0x11   : > { %s577_s6 = sshll.u32 (!%p200_p9), %s228_s26, 5 }
  0x13   : > { %v242_v0 = vld [vmem:[%s1038_s2] sm:$0x3]  ;;  %vm247_vm0 = vcmask 1041408   ;;  %s908_s9 = scalar_select %p231_p10, %s872_s22, 1  ;;  %vm243_vm1 = vcmask 31744   ;;  %vm373_vm2 = vcmask 130048  }
  0x14   : > { %v249_v1 = vsel %vm247_vm0, %v242_v0, 0  ;;  %v264_v2 = vld [vmem:[%s1040_s4] sm:$0x3] }
  0x15   : > { %258 = vmatpush.bf16.msra.mxu0 %v249_v1  ;;  %308 = vrot.lane.b32.xlu0 %v264_v2, %s814_s10  ;;  %680 = vpush %v264_v2  ;;  %s578_s12 = sshll.u32 %s908_s9, 2  ;;  %v382_v4 = vrot.slane %v264_v2, 1  ;;  %v618_v18 = vld [vmem:[%s1039_s3] sm:$0xff]  ;;  %s679_s7 = smul.u32 48, %s908_s9 }
  0x16   : > { %336 = vrot.lane.b32.xlu1 %v264_v2, %s815_s11  ;;  %364 = vrot.lane.b32.xlu2 %v264_v2, %s816_s13  ;;  %s234_s16 = scalar_lea.vmem %s1036_s0, %s578_s12  ;;  %v619_v20 = vld [vmem:[%s1039_s3] sm:$0xff] }
  0x17   : > { %v241_v3 = vld [vmem:[%s234_s16] sm:$0xf] }
  0x18   : > { %580 = vmatmul.msk.bf16.vlgmr.msra.gmra.mxu0 %vm243_vm1, %v241_v3 }
  0x1d   : > { %322 = vrot.lane.b32.xlu0 %v264_v2, %s817_s17 }
  0x1e   : > { %350 = vrot.lane.b32.xlu1 %v264_v2, %s818_s23  ;;  %419 = vrot.lane.b32.xlu2 %v382_v4, %s814_s10  ;;  %s992_s10 = scalar_lea.vmem [#allocation2], %s577_s6 }
  0x25   : > { %432 = vrot.lane.b32.xlu0 %v382_v4, %s817_s17 }
  0x26   : > { %445 = vrot.lane.b32.xlu1 %v382_v4, %s815_s11  ;;  %458 = vrot.lane.b32.xlu2 %v382_v4, %s818_s23  ;;  %s239_s11 = scalar_lea.vmem %s1037_s1, %s679_s7 }
  0x27   : > { %v929_v23 = vld [vmem:[%s239_s11] sm:$0xff]   ;;  %v933_v24 = vld [vmem:[%s239_s11 + $0x8] sm:$0xff]   ;;  %v941_v27 = vld [vmem:[%s239_s11 + $0x10] sm:$0xff]  }
  0x28   : > { %v623_v25 = vunpack.c.l.bf16 %v929_v23  ;;  %v627_v28 = vunpack.c.l.bf16 %v933_v24  ;;  %v949_v30 = vld [vmem:[%s239_s11 + $0x18] sm:$0xff]   ;;  %v631_v32 = vunpack.c.l.bf16 %v941_v27  ;;  %v955_v34 = vld [vmem:[%s239_s11 + $0x20] sm:$0xff]   ;;  %v624_v37 = vunpack.c.h.bf16 %v929_v23  ;;  %v963_v43 = vld [vmem:[%s239_s11 + $0x28] sm:$0xff]   ;;  %s620_s11 = sshll.u32 %s872_s22, 5  ;;  %s496_s22 = sshll.u32 %s992_s10, 4  ;;  %s497_s22 = int_to_ptr.vmem [resolvable:$true] %s496_s22 }
  0x29   : > { %v635_v36 = vunpack.c.l.bf16 %v949_v30  ;;  %v639_v42 = vunpack.c.l.bf16 %v955_v34  ;;  %v628_v49 = vunpack.c.h.bf16 %v933_v24  ;;  %v643_v50 = vunpack.c.l.bf16 %v963_v43 }
  0x2a   : > { %v632_v56 = vunpack.c.h.bf16 %v941_v27  ;;  %v636_v61 = vunpack.c.h.bf16 %v949_v30 }
  0x2d   : > { %471 = vrot.lane.b32.xlu0 %v382_v4, %s816_s13 }
  0x46   : > { %s931_s12 = spop %680 }
  0x47   : > { %v274_v26 = vstv %s931_s12 }
  0x48   : > { %v276_v31 = vmul.f32 %v623_v25, %v274_v26  ;;  %v277_v48 = vmul.f32 %v624_v37, %v274_v26 }
  0x70   : > { %v365_v5 = vpop.permute.xlu2 %364 }
  0x78   : > { %v420_v8 = vpop.permute.xlu2 %419 }
  0x80   : > { %v459_v11 = vpop.permute.xlu2 %458 }
  0x87   : > { %v309_v6 = vpop.permute.xlu0 %308 }
  0x88   : > { %v337_v7 = vpop.permute.xlu1 %336  ;;  %682 = vpush %v309_v6 }
  0x8f   : > { %v323_v9 = vpop.permute.xlu0 %322 }
  0x90   : > { %684 = vpush %v323_v9  ;;  %v351_v10 = vpop.permute.xlu1 %350 }
  0x91   : > { %686 = vpush %v337_v7  ;;  %v640_v7 = vunpack.c.h.bf16 %v955_v34 }
  0x92   : > { %688 = vpush %v351_v10 }
  0x93   : > { %690 = vpush %v365_v5 }
  0x94   : > { %692 = vpush %v382_v4 }
  0x95   : > { %694 = vpush %v420_v8  ;;  %v260_v12 = vpop.f32.mrf.mxu0 }
  0x96   : > { %v267_v14 = vpack.c.bf16 %v260_v12, %v260_v12 }
  0x97   : > { %v433_v13 = vpop.permute.xlu0 %432 }
  0x98   : > { %696 = vpush %v433_v13  ;;  %v446_v15 = vpop.permute.xlu1 %445  ;;  %v287_v16 = vsel %vm247_vm0, %v267_v14, 0  ;;  %v394_v17 = vrot.slane %v267_v14, 2  ;;  %v644_v14 = vunpack.c.h.bf16 %v963_v43 }
  0x99   : > { %698 = vpush %v446_v15  ;;  %296 = vmatpush.bf16.msra.mxu1 %v287_v16 }
  0x9a   : > { %700 = vpush %v459_v11  ;;  %v399_v19 = vsel %vm247_vm0, %v394_v17, 0 }
  0x9b   : > { %408 = vmatpush.bf16.msra.mxu2 %v399_v19 }
  0x9c   : > { %585 = vmatmul.msk.bf16.vlgmr.msra.gmra.mxu1 %vm243_vm1, %v618_v18 }
  0x9d   : > { %v262_v21 = vpop.f32.mrf.mxu0 }
  0x9e   : > { %600 = vmatmul.msk.bf16.vlgmr.msra.gmra.mxu2 %vm243_vm1, %v619_v20 }
  0x9f   : > { %v472_v22 = vpop.permute.xlu0 %471 }
  0xa0   : > { %702 = vpush %v472_v22 }
  0xb9   : > { %s935_s13 = spop %682 }
  0xba   : > { %v311_v29 = vstv %s935_s13 }
  0xbb   : > { %v313_v35 = vmul.f32 %v627_v28, %v311_v29  ;;  %v314_v60 = vmul.f32 %v628_v49, %v311_v29 }
  0xc1   : > { %s938_s14 = spop %684 }
  0xc2   : > { %s943_s9 = spop %686  ;;  %v325_v33 = vstv %s938_s14  ;;  %s495_s14 = scalar_lea.hbm %s1041_s5, %s620_s11 }
  0xc3   : > { %s946_s15 = spop %688  ;;  %v339_v39 = vstv %s943_s9  ;;  %v327_v41 = vmul.f32 %v631_v32, %v325_v33  ;;  %v328_v6 = vmul.f32 %v632_v56, %v325_v33  ;;  %s498_s9 = sshll.u32 %s495_s14, 4  ;;  %s499_s9 = int_to_ptr.hbm [resolvable:$true] %s498_s9 }
  0xc4   : > { %s952_s16 = spop %690  ;;  %v353_v44 = vstv %s946_s15  ;;  %v341_v47 = vmul.f32 %v635_v36, %v339_v39  ;;  %v342_v13 = vmul.f32 %v636_v61, %v339_v39  ;;  %s484_s15 = scalar_lea.sflag [#allocation3], %s228_s26 }
  0xc5   : > { %s958_s17 = spop %692  ;;  %v355_v53 = vmul.f32 %v639_v42, %v353_v44  ;;  %v367_v54 = vstv %s952_s16  ;;  %v356_v20 = vmul.f32 %v640_v7, %v353_v44  ;;  %s764_s16 = sshra.s32 %s499_s9, 4  ;;  %s765_s16 = int_to_ptr.hbm [resolvable:$true] %s764_s16 }
  0xc6   : > { %s965_s23 = spop %694  ;;  %v384_v45 = vstv %s958_s17  ;;  %v369_v62 = vmul.f32 %v643_v50, %v367_v54  ;;  %v370_v24 = vmul.f32 %v644_v14, %v367_v54  ;;  %s766_s17 = scalar_lea.hbm %s765_s16, 32 }
  0xc7   : > { %v422_v51 = vstv %s965_s23  ;;  %v386_v55 = vmul.f32 %v623_v25, %v384_v45  ;;  %v387_v16 = vmul.f32 %v624_v37, %v384_v45  ;;  %p767_p11 = scmp.ne.s32.totalorder %s765_s16, %s766_s17  ;;  %p771_p0 = scmp.lt.s32.totalorder %s765_s16, %s1041_s5 }
  0xc8   : > { %v424_v59 = vmul.f32 %v627_v28, %v422_v51  ;;  %v425_v26 = vmul.f32 %v628_v49, %v422_v51 }
  0xc9   : > { %s969_s25 = spop %696  ;;  %p768_p12 = pnand %p767_p11, %p889_p5 }
  0xca   : > { %s976_s30 = spop %698  ;;  %v435_v57 = vstv %s969_s25 }
  0xcb   : > { %s982_s7 = spop %700  ;;  %v448_v1 = vstv %s976_s30  ;;  %v437_v5 = vmul.f32 %v631_v32, %v435_v57  ;;  %v438_v30 = vmul.f32 %v632_v56, %v435_v57  ;;  %p769_p13 = pneg %p768_p12 }
  0xcc   : > { %v461_v8 = vstv %s982_s7  ;;  %v450_v12 = vmul.f32 %v635_v36, %v448_v1  ;;  %v451_v32 = vmul.f32 %v636_v61, %v448_v1  ;;  %s770_s30 = scalar_lea.hbm %s1041_s5, 64 }
  0xcd   : > { %v463_v19 = vmul.f32 %v639_v42, %v461_v8  ;;  %p772_p1 = scmp.lt.s32.totalorder %s770_s30, %s766_s17 }
  0xcf   : > { %p773_p2 = por %p772_p1, %p771_p0 }
  0xd1   : > { %s986_s8 = spop %702  ;;  %p774_p3 = pnand %p773_p2, %p769_p13 }
  0xd2   : > { %v474_v15 = vstv %s986_s8 }
  0xd3   : > { %v476_v23 = vmul.f32 %v643_v50, %v474_v15  ;;  %v477_v37 = vmul.f32 %v644_v14, %v474_v15 }
 0x119   : > { %v298_v38 = vpop.f32.mrf.mxu1 }
 0x11a   : > { %v299_v40 = vadd.f32 %v298_v38, %v276_v31 }
 0x11c   : > { %v315_v46 = vadd.f32 %v313_v35, %v299_v40  ;;  %v464_v35 = vmul.f32 %v640_v7, %v461_v8 }
 0x11e   : > { %v329_v52 = vadd.f32 %v327_v41, %v315_v46 }
 0x120   : > { %v343_v58 = vadd.f32 %v341_v47, %v329_v52 }
 0x121   : > { %v300_v63 = vpop.f32.mrf.mxu1  ;;  %v410_v0 = vpop.f32.mrf.mxu2 }
 0x122   : > { %v357_v2 = vadd.f32 %v355_v53, %v343_v58  ;;  %v301_v3 = vadd.f32 %v300_v63, %v277_v48  ;;  %v411_v4 = vadd.f32 %v410_v0, %v386_v55 }
 0x124   : > { %v371_v9 = vadd.f32 %v369_v62, %v357_v2  ;;  %v316_v10 = vadd.f32 %v314_v60, %v301_v3  ;;  %v426_v11 = vadd.f32 %v424_v59, %v411_v4 }
 0x126   : > { %374 = vst.msk [vmem:[%s992_s10] sm:$0xff] %vm373_vm2, %v371_v9  ;;  %v330_v17 = vadd.f32 %v328_v6, %v316_v10  ;;  %v439_v18 = vadd.f32 %v437_v5, %v426_v11 }
 0x128   : > { %v344_v21 = vadd.f32 %v342_v13, %v330_v17  ;;  %v452_v22 = vadd.f32 %v450_v12, %v439_v18 }
 0x129   : > { %v412_v25 = vpop.f32.mrf.mxu2 }
 0x12a   : > { %v358_v27 = vadd.f32 %v356_v20, %v344_v21  ;;  %v465_v28 = vadd.f32 %v463_v19, %v452_v22  ;;  %v413_v29 = vadd.f32 %v412_v25, %v387_v16 }
 0x12c   : > { %v372_v31 = vadd.f32 %v370_v24, %v358_v27  ;;  %v478_v33 = vadd.f32 %v476_v23, %v465_v28  ;;  %v427_v34 = vadd.f32 %v425_v26, %v413_v29 }
 0x12e   : > { %375 = vst.msk [vmem:[%s992_s10 + $0x8] sm:$0xff] %vm373_vm2, %v372_v31  ;;  %v440_v36 = vadd.f32 %v438_v30, %v427_v34 }
 0x12f   : > { %611 = vst.msk [vmem:[%s992_s10 + $0x10] sm:$0xff] %vm373_vm2, %v478_v33 }
 0x130   : > { %v453_v38 = vadd.f32 %v451_v32, %v440_v36 }
 0x132   : > { %v466_v39 = vadd.f32 %v464_v35, %v453_v38 }
 0x134   : > { %v479_v40 = vadd.f32 %v477_v37, %v466_v39 }
 0x136   : > { %612 = vst.msk [vmem:[%s992_s10 + $0x18] sm:$0xff] %vm373_vm2, %v479_v40 }
 0x137   : > { %777 = shalt.err (!%p774_p3)
}
 0x138   : > { %s819_s26 = smov 128   ;;  %s820_s8 = smov 8  }
 0x139   : > { %704 = dma.vmem_to_hbm [thread:$0]  (%p889_p5), %s497_s22, 512, %s499_s9, %s484_s15, %s819_s26, %s819_s26, %s820_s8  }
 0x13a PF: > { %p710_p4 = scmp.ge.s32.totalorder %s812_s21, 2  ;;  %s513_s10 = sand.u32 1, %s800_s18  }
 0x13b   : > { %s514_s11 = scalar_lea.sflag [#allocation3], %s513_s10 }
 0x13c   : > { %p707_p7 = pnand %p710_p4, %p893_p6 }
 0x13e   : > { %p708_p8 = pneg %p707_p7 }
 0x140   : > { %795 = dma.done.wait (%p708_p8), %s514_s11, 512  }
 0x141   : > { %797 = vsyncadd (%p708_p8), %s514_s11, 4294966784  ;;  %p15_p9 = scmp.ge.s32.totalorder %s876_s24, 4   ;;  %s1044_s18 = smov %s804_s19 }
 0x142   : > { %s1045_s19 = smov %s808_s20  ;;  %s1046_s20 = smov %s887_s27 }
 0x143   : > { %s1047_s21 = smov %s876_s24  ;;  %17 = sbr.rel (!%p15_p9) target bundleno = 3 (0x3), region = 84 }
 0x148   :  { %520 = vsyncpa [#allocation3], 1 }
 0x149   :  { %522 = vsyncpa [#allocation3 + $0x1], 1 }

</bundles_post_ra>
